<compile_context>
chip_gen: v6e
topology: v6e:2x2x1
jax: 0.10.0
libtpu: 0.0.40
codegen_flags: <defaults>
</compile_context>

<pallas_src>
import math

import jax
import jax.numpy as jnp
from jax.experimental import pallas as pl
from jax.experimental.pallas import tpu as pltpu

F32 = jnp.float32


# ----------------------------------------------------------------------------- kernel
def make_bert_attention_kernel(num_heads, head_dim, layer_norm_eps):
    H = num_heads * head_dim
    scale = 1.0 / math.sqrt(head_dim)

    def kernel(x_ref, mask_ref, wq_ref, bq_ref, wk_ref, bk_ref,
               wv_ref, bv_ref, wo_ref, bo_ref, g_ref, beta_ref,
               out_ref, probs_ref):
        x = x_ref[0].astype(F32)          # (S, H)  one batch row
        mask = mask_ref[0].astype(F32)    # (1, S)  additive attention mask

        # Q / K / V projections (weights are (H, H) = (in, out), so x @ W).
        q = jnp.dot(x, wq_ref[...], preferred_element_type=F32) + bq_ref[...]
        k = jnp.dot(x, wk_ref[...], preferred_element_type=F32) + bk_ref[...]
        v = jnp.dot(x, wv_ref[...], preferred_element_type=F32) + bv_ref[...]

        wo = wo_ref[...]                  # (H, H) loaded once, value-sliced per head

        # dense(context) accumulated per head; avoids building the (S, nh, hd)
        # context tensor / the permute+view of the torch code.
        dense = jnp.zeros(x.shape, F32)
        for h in range(num_heads):
            sl = slice(h * head_dim, (h + 1) * head_dim)
            qh = q[:, sl]                 # (S, hd)
            kh = k[:, sl]
            vh = v[:, sl]

            # attention_scores = qh @ kh.T / sqrt(hd) + mask
            scores = jax.lax.dot_general(
                qh, kh, (((1,), (1,)), ((), ())),
                preferred_element_type=F32) * scale + mask      # (S, S)

            # stable softmax over the key axis
            m = jnp.max(scores, axis=-1, keepdims=True)
            e = jnp.exp(scores - m)
            probs = e / jnp.sum(e, axis=-1, keepdims=True)      # (S, S)
            # TODO(synk): attention dropout is identity (inference); the
            # training-time dropout mask is not implemented.
            probs_ref[0, h] = probs.astype(probs_ref.dtype)

            ctx = jnp.dot(probs, vh, preferred_element_type=F32)        # (S, hd)
            dense = dense + jnp.dot(ctx, wo[sl, :],
                                    preferred_element_type=F32)         # (S, H)

        # BertSelfOutput: dense + bias, (dropout = id), residual, LayerNorm
        y = dense + bo_ref[...] + x
        mu = jnp.mean(y, axis=-1, keepdims=True)
        d = y - mu
        var = jnp.mean(d * d, axis=-1, keepdims=True)
        inv = jax.lax.rsqrt(var + layer_norm_eps)
        out = d * inv * g_ref[...] + beta_ref[...]
        out_ref[0] = out.astype(out_ref.dtype)

    return kernel


# ----------------------------------------------------------------------------- wrapper
def bert_attention_forward(p, hidden_states, attention_mask, cfg):
    """hidden_states: (B, S, H); attention_mask: additive, (B, 1, 1, S)."""
    B, S, H = hidden_states.shape
    nh = cfg["num_attention_heads"]
    hd = H // nh
    eps = cfg["layer_norm_eps"]

    # collapse the broadcast dims of the extended mask -> (B, 1, S)
    mask3 = attention_mask.reshape(B, 1, S).astype(F32)

    def full(shape):
        return pl.BlockSpec(shape, lambda b, _s=shape: (0,) * len(_s))

    in_specs = [
        pl.BlockSpec((1, S, H), lambda b: (b, 0, 0)),      # hidden_states row
        pl.BlockSpec((1, 1, S), lambda b: (b, 0, 0)),      # attention mask row
        full((H, H)), full((1, H)),                        # query
        full((H, H)), full((1, H)),                        # key
        full((H, H)), full((1, H)),                        # value
        full((H, H)), full((1, H)),                        # output dense
        full((1, H)), full((1, H)),                        # LayerNorm gamma / beta
    ]
    out_specs = (
        pl.BlockSpec((1, S, H), lambda b: (b, 0, 0)),
        pl.BlockSpec((1, nh, S, S), lambda b: (b, 0, 0, 0)),
    )
    out_shape = (
        jax.ShapeDtypeStruct((B, S, H), F32),
        jax.ShapeDtypeStruct((B, nh, S, S), F32),
    )

    attn_out, probs = pl.pallas_call(
        make_bert_attention_kernel(nh, hd, eps),
        grid=(B,),
        in_specs=in_specs,
        out_specs=out_specs,
        out_shape=out_shape,
        compiler_params=pltpu.CompilerParams(
            dimension_semantics=("parallel",)),
    )(hidden_states, mask3,
      p["wq"], p["bq"], p["wk"], p["bk"],
      p["wv"], p["bv"], p["wo"], p["bo"],
      p["gamma"], p["beta"])
    return attn_out, probs


# ----------------------------------------------------------------------------- reference
def reference_forward(p, x, attention_mask, cfg):
    B, S, H = x.shape
    nh = cfg["num_attention_heads"]
    hd = H // nh
    eps = cfg["layer_norm_eps"]

    q = x @ p["wq"] + p["bq"][0]
    k = x @ p["wk"] + p["bk"][0]
    v = x @ p["wv"] + p["bv"][0]

    def split(t):   # transpose_for_scores
        return t.reshape(B, S, nh, hd).transpose(0, 2, 1, 3)

    qh, kh, vh = split(q), split(k), split(v)
    scores = jnp.einsum("bhqd,bhkd->bhqk", qh, kh) / math.sqrt(hd)
    scores = scores + attention_mask                       # (B,1,1,S) broadcast
    probs = jax.nn.softmax(scores, axis=-1)
    ctx = jnp.einsum("bhqk,bhkd->bhqd", probs, vh)
    ctx = ctx.transpose(0, 2, 1, 3).reshape(B, S, H)

    dense = ctx @ p["wo"] + p["bo"][0]
    y = dense + x
    mu = y.mean(-1, keepdims=True)
    var = ((y - mu) ** 2).mean(-1, keepdims=True)
    out = (y - mu) / jnp.sqrt(var + eps) * p["gamma"][0] + p["beta"][0]
    return out, probs


# ----------------------------------------------------------------------------- params
def init_params(key, H):
    ks = jax.random.split(key, 10)

    def linear(kw, kb, in_f, out_f):
        bound = 1.0 / math.sqrt(in_f)
        w = jax.random.uniform(kw, (in_f, out_f), F32, -bound, bound)
        b = jax.random.uniform(kb, (1, out_f), F32, -bound, bound)
        return w, b

    p = {}
    p["wq"], p["bq"] = linear(ks[0], ks[1], H, H)
    p["wk"], p["bk"] = linear(ks[2], ks[3], H, H)
    p["wv"], p["bv"] = linear(ks[4], ks[5], H, H)
    p["wo"], p["bo"] = linear(ks[6], ks[7], H, H)
    p["gamma"] = 1.0 + 0.1 * jax.random.normal(ks[8], (1, H), F32)
    p["beta"] = 0.1 * jax.random.normal(ks[9], (1, H), F32)
    return p


# ----------------------------------------------------------------------------- main
if __name__ == "__main__":
    cfg = dict(hidden_size=32, num_attention_heads=4, layer_norm_eps=1e-12)
    B, S, H = 2, 8, cfg["hidden_size"]

    key = jax.random.PRNGKey(0)
    pkey, xkey = jax.random.split(key)
    params = init_params(pkey, H)
    hidden_states = jax.random.normal(xkey, (B, S, H), F32)

    # extended additive attention mask (BERT style): 0 for keep, -1e4 for pad
    lens = jnp.array([S, 5])
    keep = (jnp.arange(S)[None, :] < lens[:, None]).astype(F32)     # (B, S)
    attention_mask = ((1.0 - keep) * -10000.0).reshape(B, 1, 1, S)

    attn_out, probs = bert_attention_forward(params, hidden_states,
                                             attention_mask, cfg)
    attn_out = jax.block_until_ready(attn_out)
    probs = jax.block_until_ready(probs)

    ref_out, ref_probs = reference_forward(params, hidden_states,
                                           attention_mask, cfg)

    assert attn_out.shape == (B, S, H)
    assert probs.shape == (B, cfg["num_attention_heads"], S, S)
    assert jnp.allclose(attn_out, ref_out, atol=1e-4, rtol=1e-4)
    assert jnp.allclose(probs, ref_probs, atol=1e-5, rtol=1e-4)

    print("KERNEL_OK")
</pallas_src>

<mosaic_0001>
module attributes {stable_mosaic.version = 11 : i64} {
  func.func @kernel(%arg0: i32, %arg1: memref<1x8x32xf32, #tpu.memory_space<vmem>>, %arg2: memref<1x1x8xf32, #tpu.memory_space<vmem>>, %arg3: memref<32x32xf32, #tpu.memory_space<vmem>>, %arg4: memref<1x32xf32, #tpu.memory_space<vmem>>, %arg5: memref<32x32xf32, #tpu.memory_space<vmem>>, %arg6: memref<1x32xf32, #tpu.memory_space<vmem>>, %arg7: memref<32x32xf32, #tpu.memory_space<vmem>>, %arg8: memref<1x32xf32, #tpu.memory_space<vmem>>, %arg9: memref<32x32xf32, #tpu.memory_space<vmem>>, %arg10: memref<1x32xf32, #tpu.memory_space<vmem>>, %arg11: memref<1x32xf32, #tpu.memory_space<vmem>>, %arg12: memref<1x32xf32, #tpu.memory_space<vmem>>, %arg13: memref<1x8x32xf32, #tpu.memory_space<vmem>>, %arg14: memref<1x4x8x8xf32, #tpu.memory_space<vmem>>) attributes {dimension_semantics = [#tpu.dimension_semantics<parallel>], iteration_bounds = array<i64: 2>, scalar_prefetch = 0 : i64, scratch_operands = 0 : i64, tpu.core_type = #tpu.core_type<tc>, window_params = [{transform_indices = @transform_0, window_bounds = array<i64: 1, 8, 32>}, {transform_indices = @transform_1, window_bounds = array<i64: 1, 1, 8>}, {pipeline_mode = #tpu.pipeline_mode<synchronous>, transform_indices = @transform_2, window_bounds = array<i64: 32, 32>}, {pipeline_mode = #tpu.pipeline_mode<synchronous>, transform_indices = @transform_3, window_bounds = array<i64: 1, 32>}, {pipeline_mode = #tpu.pipeline_mode<synchronous>, transform_indices = @transform_4, window_bounds = array<i64: 32, 32>}, {pipeline_mode = #tpu.pipeline_mode<synchronous>, transform_indices = @transform_5, window_bounds = array<i64: 1, 32>}, {pipeline_mode = #tpu.pipeline_mode<synchronous>, transform_indices = @transform_6, window_bounds = array<i64: 32, 32>}, {pipeline_mode = #tpu.pipeline_mode<synchronous>, transform_indices = @transform_7, window_bounds = array<i64: 1, 32>}, {pipeline_mode = #tpu.pipeline_mode<synchronous>, transform_indices = @transform_8, window_bounds = array<i64: 32, 32>}, {pipeline_mode = #tpu.pipeline_mode<synchronous>, transform_indices = @transform_9, window_bounds = array<i64: 1, 32>}, {pipeline_mode = #tpu.pipeline_mode<synchronous>, transform_indices = @transform_10, window_bounds = array<i64: 1, 32>}, {pipeline_mode = #tpu.pipeline_mode<synchronous>, transform_indices = @transform_11, window_bounds = array<i64: 1, 32>}, {transform_indices = @transform_12, window_bounds = array<i64: 1, 8, 32>}, {transform_indices = @transform_13, window_bounds = array<i64: 1, 4, 8, 8>}]} {
    %c0 = arith.constant 0 : index
    %c0_0 = arith.constant 0 : index
    %c0_1 = arith.constant 0 : index
    %0 = vector.load %arg1[%c0, %c0_0, %c0_1] : memref<1x8x32xf32, #tpu.memory_space<vmem>>, vector<1x8x32xf32>
    %1 = vector.shape_cast %0 : vector<1x8x32xf32> to vector<8x32xf32>
    %c0_2 = arith.constant 0 : index
    %c0_3 = arith.constant 0 : index
    %c0_4 = arith.constant 0 : index
    %2 = vector.load %arg2[%c0_2, %c0_3, %c0_4] : memref<1x1x8xf32, #tpu.memory_space<vmem>>, vector<1x1x8xf32>
    %3 = vector.shape_cast %2 : vector<1x1x8xf32> to vector<1x8xf32>
    %c0_5 = arith.constant 0 : index
    %c0_6 = arith.constant 0 : index
    %4 = vector.load %arg3[%c0_5, %c0_6] : memref<32x32xf32, #tpu.memory_space<vmem>>, vector<32x32xf32>
    %cst = arith.constant dense<0.000000e+00> : vector<8x32xf32>
    %5 = tpu.matmul %1, %4, %cst {dimension_numbers = #tpu.dot_dimension_numbers<[1], [0], [0], [1], [0, 0, 1, 1], [], []>} : vector<8x32xf32>, vector<32x32xf32>, vector<8x32xf32> -> vector<8x32xf32>
    %c0_7 = arith.constant 0 : index
    %c0_8 = arith.constant 0 : index
    %6 = vector.load %arg4[%c0_7, %c0_8] : memref<1x32xf32, #tpu.memory_space<vmem>>, vector<1x32xf32>
    %7 = vector.broadcast %6 : vector<1x32xf32> to vector<8x32xf32>
    %8 = arith.addf %5, %7 : vector<8x32xf32>
    %c0_9 = arith.constant 0 : index
    %c0_10 = arith.constant 0 : index
    %9 = vector.load %arg5[%c0_9, %c0_10] : memref<32x32xf32, #tpu.memory_space<vmem>>, vector<32x32xf32>
    %cst_11 = arith.constant dense<0.000000e+00> : vector<8x32xf32>
    %10 = tpu.matmul %1, %9, %cst_11 {dimension_numbers = #tpu.dot_dimension_numbers<[1], [0], [0], [1], [0, 0, 1, 1], [], []>} : vector<8x32xf32>, vector<32x32xf32>, vector<8x32xf32> -> vector<8x32xf32>
    %c0_12 = arith.constant 0 : index
    %c0_13 = arith.constant 0 : index
    %11 = vector.load %arg6[%c0_12, %c0_13] : memref<1x32xf32, #tpu.memory_space<vmem>>, vector<1x32xf32>
    %12 = vector.broadcast %11 : vector<1x32xf32> to vector<8x32xf32>
    %13 = arith.addf %10, %12 : vector<8x32xf32>
    %c0_14 = arith.constant 0 : index
    %c0_15 = arith.constant 0 : index
    %14 = vector.load %arg7[%c0_14, %c0_15] : memref<32x32xf32, #tpu.memory_space<vmem>>, vector<32x32xf32>
    %cst_16 = arith.constant dense<0.000000e+00> : vector<8x32xf32>
    %15 = tpu.matmul %1, %14, %cst_16 {dimension_numbers = #tpu.dot_dimension_numbers<[1], [0], [0], [1], [0, 0, 1, 1], [], []>} : vector<8x32xf32>, vector<32x32xf32>, vector<8x32xf32> -> vector<8x32xf32>
    %c0_17 = arith.constant 0 : index
    %c0_18 = arith.constant 0 : index
    %16 = vector.load %arg8[%c0_17, %c0_18] : memref<1x32xf32, #tpu.memory_space<vmem>>, vector<1x32xf32>
    %17 = vector.broadcast %16 : vector<1x32xf32> to vector<8x32xf32>
    %18 = arith.addf %15, %17 : vector<8x32xf32>
    %c0_19 = arith.constant 0 : index
    %c0_20 = arith.constant 0 : index
    %19 = vector.load %arg9[%c0_19, %c0_20] : memref<32x32xf32, #tpu.memory_space<vmem>>, vector<32x32xf32>
    %cst_21 = arith.constant 0.000000e+00 : f32
    %20 = vector.broadcast %cst_21 : f32 to vector<8x32xf32>
    %21 = vector.extract_strided_slice %8 {offsets = [0, 0], sizes = [8, 8], strides = [1, 1]} : vector<8x32xf32> to vector<8x8xf32>
    %22 = vector.extract_strided_slice %13 {offsets = [0, 0], sizes = [8, 8], strides = [1, 1]} : vector<8x32xf32> to vector<8x8xf32>
    %23 = vector.extract_strided_slice %18 {offsets = [0, 0], sizes = [8, 8], strides = [1, 1]} : vector<8x32xf32> to vector<8x8xf32>
    %cst_22 = arith.constant dense<0.000000e+00> : vector<8x8xf32>
    %24 = tpu.matmul %21, %22, %cst_22 {dimension_numbers = #tpu.dot_dimension_numbers<[1], [1], [0], [0], [0, 0, 1, 0], [], []>} : vector<8x8xf32>, vector<8x8xf32>, vector<8x8xf32> -> vector<8x8xf32>
    %cst_23 = arith.constant 0.353553385 : f32
    %25 = vector.broadcast %cst_23 : f32 to vector<8x8xf32>
    %26 = arith.mulf %24, %25 : vector<8x8xf32>
    %27 = vector.broadcast %3 : vector<1x8xf32> to vector<8x8xf32>
    %28 = arith.addf %26, %27 : vector<8x8xf32>
    %cst_24 = arith.constant dense<0xFF800000> : vector<8xf32>
    %29 = vector.multi_reduction <maximumf>, %28, %cst_24 [1] : vector<8x8xf32> to vector<8xf32>
    %30 = vector.shape_cast %29 : vector<8xf32> to vector<8x1xf32>
    %31 = vector.broadcast %30 : vector<8x1xf32> to vector<8x8xf32>
    %32 = arith.subf %28, %31 : vector<8x8xf32>
    %33 = math.exp %32 : vector<8x8xf32>
    %cst_25 = arith.constant dense<0.000000e+00> : vector<8xf32>
    %34 = vector.multi_reduction <add>, %33, %cst_25 [1] : vector<8x8xf32> to vector<8xf32>
    %35 = vector.shape_cast %34 : vector<8xf32> to vector<8x1xf32>
    %36 = vector.broadcast %35 : vector<8x1xf32> to vector<8x8xf32>
    %37 = arith.divf %33, %36 : vector<8x8xf32>
    %c0_26 = arith.constant 0 : index
    %c0_27 = arith.constant 0 : index
    %c0_28 = arith.constant 0 : index
    %c0_29 = arith.constant 0 : index
    %38 = vector.load %arg14[%c0_26, %c0_27, %c0_28, %c0_29] : memref<1x4x8x8xf32, #tpu.memory_space<vmem>>, vector<1x1x8x8xf32>
    %39 = vector.shape_cast %38 : vector<1x1x8x8xf32> to vector<8x8xf32>
    %40 = vector.shape_cast %37 : vector<8x8xf32> to vector<1x1x8x8xf32>
    tpu.vector_store %arg14[%c0_26, %c0_27, %c0_28, %c0_29], %40 {strides = array<i32>} : memref<1x4x8x8xf32, #tpu.memory_space<vmem>>, vector<1x1x8x8xf32>,
    %cst_30 = arith.constant dense<0.000000e+00> : vector<8x8xf32>
    %41 = tpu.matmul %37, %23, %cst_30 {dimension_numbers = #tpu.dot_dimension_numbers<[1], [0], [0], [1], [0, 0, 1, 1], [], []>} : vector<8x8xf32>, vector<8x8xf32>, vector<8x8xf32> -> vector<8x8xf32>
    %42 = vector.extract_strided_slice %19 {offsets = [0, 0], sizes = [8, 32], strides = [1, 1]} : vector<32x32xf32> to vector<8x32xf32>
    %cst_31 = arith.constant dense<0.000000e+00> : vector<8x32xf32>
    %43 = tpu.matmul %41, %42, %cst_31 {dimension_numbers = #tpu.dot_dimension_numbers<[1], [0], [0], [1], [0, 0, 1, 1], [], []>} : vector<8x8xf32>, vector<8x32xf32>, vector<8x32xf32> -> vector<8x32xf32>
    %44 = arith.addf %20, %43 : vector<8x32xf32>
    %45 = vector.extract_strided_slice %8 {offsets = [0, 8], sizes = [8, 8], strides = [1, 1]} : vector<8x32xf32> to vector<8x8xf32>
    %46 = vector.extract_strided_slice %13 {offsets = [0, 8], sizes = [8, 8], strides = [1, 1]} : vector<8x32xf32> to vector<8x8xf32>
    %47 = vector.extract_strided_slice %18 {offsets = [0, 8], sizes = [8, 8], strides = [1, 1]} : vector<8x32xf32> to vector<8x8xf32>
    %cst_32 = arith.constant dense<0.000000e+00> : vector<8x8xf32>
    %48 = tpu.matmul %45, %46, %cst_32 {dimension_numbers = #tpu.dot_dimension_numbers<[1], [1], [0], [0], [0, 0, 1, 0], [], []>} : vector<8x8xf32>, vector<8x8xf32>, vector<8x8xf32> -> vector<8x8xf32>
    %cst_33 = arith.constant 0.353553385 : f32
    %49 = vector.broadcast %cst_33 : f32 to vector<8x8xf32>
    %50 = arith.mulf %48, %49 : vector<8x8xf32>
    %51 = vector.broadcast %3 : vector<1x8xf32> to vector<8x8xf32>
    %52 = arith.addf %50, %51 : vector<8x8xf32>
    %cst_34 = arith.constant dense<0xFF800000> : vector<8xf32>
    %53 = vector.multi_reduction <maximumf>, %52, %cst_34 [1] : vector<8x8xf32> to vector<8xf32>
    %54 = vector.shape_cast %53 : vector<8xf32> to vector<8x1xf32>
    %55 = vector.broadcast %54 : vector<8x1xf32> to vector<8x8xf32>
    %56 = arith.subf %52, %55 : vector<8x8xf32>
    %57 = math.exp %56 : vector<8x8xf32>
    %cst_35 = arith.constant dense<0.000000e+00> : vector<8xf32>
    %58 = vector.multi_reduction <add>, %57, %cst_35 [1] : vector<8x8xf32> to vector<8xf32>
    %59 = vector.shape_cast %58 : vector<8xf32> to vector<8x1xf32>
    %60 = vector.broadcast %59 : vector<8x1xf32> to vector<8x8xf32>
    %61 = arith.divf %57, %60 : vector<8x8xf32>
    %c0_36 = arith.constant 0 : index
    %c1 = arith.constant 1 : index
    %c0_37 = arith.constant 0 : index
    %c0_38 = arith.constant 0 : index
    %62 = vector.load %arg14[%c0_36, %c1, %c0_37, %c0_38] : memref<1x4x8x8xf32, #tpu.memory_space<vmem>>, vector<1x1x8x8xf32>
    %63 = vector.shape_cast %62 : vector<1x1x8x8xf32> to vector<8x8xf32>
    %64 = vector.shape_cast %61 : vector<8x8xf32> to vector<1x1x8x8xf32>
    tpu.vector_store %arg14[%c0_36, %c1, %c0_37, %c0_38], %64 {strides = array<i32>} : memref<1x4x8x8xf32, #tpu.memory_space<vmem>>, vector<1x1x8x8xf32>,
    %cst_39 = arith.constant dense<0.000000e+00> : vector<8x8xf32>
    %65 = tpu.matmul %61, %47, %cst_39 {dimension_numbers = #tpu.dot_dimension_numbers<[1], [0], [0], [1], [0, 0, 1, 1], [], []>} : vector<8x8xf32>, vector<8x8xf32>, vector<8x8xf32> -> vector<8x8xf32>
    %66 = vector.extract_strided_slice %19 {offsets = [8, 0], sizes = [8, 32], strides = [1, 1]} : vector<32x32xf32> to vector<8x32xf32>
    %cst_40 = arith.constant dense<0.000000e+00> : vector<8x32xf32>
    %67 = tpu.matmul %65, %66, %cst_40 {dimension_numbers = #tpu.dot_dimension_numbers<[1], [0], [0], [1], [0, 0, 1, 1], [], []>} : vector<8x8xf32>, vector<8x32xf32>, vector<8x32xf32> -> vector<8x32xf32>
    %68 = arith.addf %44, %67 : vector<8x32xf32>
    %69 = vector.extract_strided_slice %8 {offsets = [0, 16], sizes = [8, 8], strides = [1, 1]} : vector<8x32xf32> to vector<8x8xf32>
    %70 = vector.extract_strided_slice %13 {offsets = [0, 16], sizes = [8, 8], strides = [1, 1]} : vector<8x32xf32> to vector<8x8xf32>
    %71 = vector.extract_strided_slice %18 {offsets = [0, 16], sizes = [8, 8], strides = [1, 1]} : vector<8x32xf32> to vector<8x8xf32>
    %cst_41 = arith.constant dense<0.000000e+00> : vector<8x8xf32>
    %72 = tpu.matmul %69, %70, %cst_41 {dimension_numbers = #tpu.dot_dimension_numbers<[1], [1], [0], [0], [0, 0, 1, 0], [], []>} : vector<8x8xf32>, vector<8x8xf32>, vector<8x8xf32> -> vector<8x8xf32>
    %cst_42 = arith.constant 0.353553385 : f32
    %73 = vector.broadcast %cst_42 : f32 to vector<8x8xf32>
    %74 = arith.mulf %72, %73 : vector<8x8xf32>
    %75 = vector.broadcast %3 : vector<1x8xf32> to vector<8x8xf32>
    %76 = arith.addf %74, %75 : vector<8x8xf32>
    %cst_43 = arith.constant dense<0xFF800000> : vector<8xf32>
    %77 = vector.multi_reduction <maximumf>, %76, %cst_43 [1] : vector<8x8xf32> to vector<8xf32>
    %78 = vector.shape_cast %77 : vector<8xf32> to vector<8x1xf32>
    %79 = vector.broadcast %78 : vector<8x1xf32> to vector<8x8xf32>
    %80 = arith.subf %76, %79 : vector<8x8xf32>
    %81 = math.exp %80 : vector<8x8xf32>
    %cst_44 = arith.constant dense<0.000000e+00> : vector<8xf32>
    %82 = vector.multi_reduction <add>, %81, %cst_44 [1] : vector<8x8xf32> to vector<8xf32>
    %83 = vector.shape_cast %82 : vector<8xf32> to vector<8x1xf32>
    %84 = vector.broadcast %83 : vector<8x1xf32> to vector<8x8xf32>
    %85 = arith.divf %81, %84 : vector<8x8xf32>
    %c0_45 = arith.constant 0 : index
    %c2 = arith.constant 2 : index
    %c0_46 = arith.constant 0 : index
    %c0_47 = arith.constant 0 : index
    %86 = vector.load %arg14[%c0_45, %c2, %c0_46, %c0_47] : memref<1x4x8x8xf32, #tpu.memory_space<vmem>>, vector<1x1x8x8xf32>
    %87 = vector.shape_cast %86 : vector<1x1x8x8xf32> to vector<8x8xf32>
    %88 = vector.shape_cast %85 : vector<8x8xf32> to vector<1x1x8x8xf32>
    tpu.vector_store %arg14[%c0_45, %c2, %c0_46, %c0_47], %88 {strides = array<i32>} : memref<1x4x8x8xf32, #tpu.memory_space<vmem>>, vector<1x1x8x8xf32>,
    %cst_48 = arith.constant dense<0.000000e+00> : vector<8x8xf32>
    %89 = tpu.matmul %85, %71, %cst_48 {dimension_numbers = #tpu.dot_dimension_numbers<[1], [0], [0], [1], [0, 0, 1, 1], [], []>} : vector<8x8xf32>, vector<8x8xf32>, vector<8x8xf32> -> vector<8x8xf32>
    %90 = vector.extract_strided_slice %19 {offsets = [16, 0], sizes = [8, 32], strides = [1, 1]} : vector<32x32xf32> to vector<8x32xf32>
    %cst_49 = arith.constant dense<0.000000e+00> : vector<8x32xf32>
    %91 = tpu.matmul %89, %90, %cst_49 {dimension_numbers = #tpu.dot_dimension_numbers<[1], [0], [0], [1], [0, 0, 1, 1], [], []>} : vector<8x8xf32>, vector<8x32xf32>, vector<8x32xf32> -> vector<8x32xf32>
    %92 = arith.addf %68, %91 : vector<8x32xf32>
    %93 = vector.extract_strided_slice %8 {offsets = [0, 24], sizes = [8, 8], strides = [1, 1]} : vector<8x32xf32> to vector<8x8xf32>
    %94 = vector.extract_strided_slice %13 {offsets = [0, 24], sizes = [8, 8], strides = [1, 1]} : vector<8x32xf32> to vector<8x8xf32>
    %95 = vector.extract_strided_slice %18 {offsets = [0, 24], sizes = [8, 8], strides = [1, 1]} : vector<8x32xf32> to vector<8x8xf32>
    %cst_50 = arith.constant dense<0.000000e+00> : vector<8x8xf32>
    %96 = tpu.matmul %93, %94, %cst_50 {dimension_numbers = #tpu.dot_dimension_numbers<[1], [1], [0], [0], [0, 0, 1, 0], [], []>} : vector<8x8xf32>, vector<8x8xf32>, vector<8x8xf32> -> vector<8x8xf32>
    %cst_51 = arith.constant 0.353553385 : f32
    %97 = vector.broadcast %cst_51 : f32 to vector<8x8xf32>
    %98 = arith.mulf %96, %97 : vector<8x8xf32>
    %99 = vector.broadcast %3 : vector<1x8xf32> to vector<8x8xf32>
    %100 = arith.addf %98, %99 : vector<8x8xf32>
    %cst_52 = arith.constant dense<0xFF800000> : vector<8xf32>
    %101 = vector.multi_reduction <maximumf>, %100, %cst_52 [1] : vector<8x8xf32> to vector<8xf32>
    %102 = vector.shape_cast %101 : vector<8xf32> to vector<8x1xf32>
    %103 = vector.broadcast %102 : vector<8x1xf32> to vector<8x8xf32>
    %104 = arith.subf %100, %103 : vector<8x8xf32>
    %105 = math.exp %104 : vector<8x8xf32>
    %cst_53 = arith.constant dense<0.000000e+00> : vector<8xf32>
    %106 = vector.multi_reduction <add>, %105, %cst_53 [1] : vector<8x8xf32> to vector<8xf32>
    %107 = vector.shape_cast %106 : vector<8xf32> to vector<8x1xf32>
    %108 = vector.broadcast %107 : vector<8x1xf32> to vector<8x8xf32>
    %109 = arith.divf %105, %108 : vector<8x8xf32>
    %c0_54 = arith.constant 0 : index
    %c3 = arith.constant 3 : index
    %c0_55 = arith.constant 0 : index
    %c0_56 = arith.constant 0 : index
    %110 = vector.load %arg14[%c0_54, %c3, %c0_55, %c0_56] : memref<1x4x8x8xf32, #tpu.memory_space<vmem>>, vector<1x1x8x8xf32>
    %111 = vector.shape_cast %110 : vector<1x1x8x8xf32> to vector<8x8xf32>
    %112 = vector.shape_cast %109 : vector<8x8xf32> to vector<1x1x8x8xf32>
    tpu.vector_store %arg14[%c0_54, %c3, %c0_55, %c0_56], %112 {strides = array<i32>} : memref<1x4x8x8xf32, #tpu.memory_space<vmem>>, vector<1x1x8x8xf32>,
    %cst_57 = arith.constant dense<0.000000e+00> : vector<8x8xf32>
    %113 = tpu.matmul %109, %95, %cst_57 {dimension_numbers = #tpu.dot_dimension_numbers<[1], [0], [0], [1], [0, 0, 1, 1], [], []>} : vector<8x8xf32>, vector<8x8xf32>, vector<8x8xf32> -> vector<8x8xf32>
    %114 = vector.extract_strided_slice %19 {offsets = [24, 0], sizes = [8, 32], strides = [1, 1]} : vector<32x32xf32> to vector<8x32xf32>
    %cst_58 = arith.constant dense<0.000000e+00> : vector<8x32xf32>
    %115 = tpu.matmul %113, %114, %cst_58 {dimension_numbers = #tpu.dot_dimension_numbers<[1], [0], [0], [1], [0, 0, 1, 1], [], []>} : vector<8x8xf32>, vector<8x32xf32>, vector<8x32xf32> -> vector<8x32xf32>
    %116 = arith.addf %92, %115 : vector<8x32xf32>
    %c0_59 = arith.constant 0 : index
    %c0_60 = arith.constant 0 : index
    %117 = vector.load %arg10[%c0_59, %c0_60] : memref<1x32xf32, #tpu.memory_space<vmem>>, vector<1x32xf32>
    %118 = vector.broadcast %117 : vector<1x32xf32> to vector<8x32xf32>
    %119 = arith.addf %116, %118 : vector<8x32xf32>
    %120 = arith.addf %119, %1 : vector<8x32xf32>
    %cst_61 = arith.constant dense<0.000000e+00> : vector<8xf32>
    %121 = vector.multi_reduction <add>, %120, %cst_61 [1] : vector<8x32xf32> to vector<8xf32>
    %122 = vector.shape_cast %121 : vector<8xf32> to vector<8x1xf32>
    %cst_62 = arith.constant 3.200000e+01 : f32
    %123 = vector.broadcast %cst_62 : f32 to vector<8x1xf32>
    %124 = arith.divf %122, %123 : vector<8x1xf32>
    %125 = vector.broadcast %124 : vector<8x1xf32> to vector<8x32xf32>
    %126 = arith.subf %120, %125 : vector<8x32xf32>
    %127 = arith.mulf %126, %126 : vector<8x32xf32>
    %cst_63 = arith.constant dense<0.000000e+00> : vector<8xf32>
    %128 = vector.multi_reduction <add>, %127, %cst_63 [1] : vector<8x32xf32> to vector<8xf32>
    %129 = vector.shape_cast %128 : vector<8xf32> to vector<8x1xf32>
    %cst_64 = arith.constant 3.200000e+01 : f32
    %130 = vector.broadcast %cst_64 : f32 to vector<8x1xf32>
    %131 = arith.divf %129, %130 : vector<8x1xf32>
    %cst_65 = arith.constant 9.99999996E-13 : f32
    %132 = vector.broadcast %cst_65 : f32 to vector<8x1xf32>
    %133 = arith.addf %131, %132 : vector<8x1xf32>
    %134 = math.rsqrt %133 : vector<8x1xf32>
    %135 = vector.broadcast %134 : vector<8x1xf32> to vector<8x32xf32>
    %136 = arith.mulf %126, %135 : vector<8x32xf32>
    %c0_66 = arith.constant 0 : index
    %c0_67 = arith.constant 0 : index
    %137 = vector.load %arg11[%c0_66, %c0_67] : memref<1x32xf32, #tpu.memory_space<vmem>>, vector<1x32xf32>
    %138 = vector.broadcast %137 : vector<1x32xf32> to vector<8x32xf32>
    %139 = arith.mulf %136, %138 : vector<8x32xf32>
    %c0_68 = arith.constant 0 : index
    %c0_69 = arith.constant 0 : index
    %140 = vector.load %arg12[%c0_68, %c0_69] : memref<1x32xf32, #tpu.memory_space<vmem>>, vector<1x32xf32>
    %141 = vector.broadcast %140 : vector<1x32xf32> to vector<8x32xf32>
    %142 = arith.addf %139, %141 : vector<8x32xf32>
    %c0_70 = arith.constant 0 : index
    %c0_71 = arith.constant 0 : index
    %c0_72 = arith.constant 0 : index
    %143 = vector.load %arg13[%c0_70, %c0_71, %c0_72] : memref<1x8x32xf32, #tpu.memory_space<vmem>>, vector<1x8x32xf32>
    %144 = vector.shape_cast %143 : vector<1x8x32xf32> to vector<8x32xf32>
    %145 = vector.shape_cast %142 : vector<8x32xf32> to vector<1x8x32xf32>
    tpu.vector_store %arg13[%c0_70, %c0_71, %c0_72], %145 {strides = array<i32>} : memref<1x8x32xf32, #tpu.memory_space<vmem>>, vector<1x8x32xf32>,
    return
  }
  func.func @transform_0(%arg0: i32) -> (i32, i32, i32) {
    %c0_i32 = arith.constant 0 : i32
    %c0_i32_0 = arith.constant 0 : i32
    %c0_i32_1 = arith.constant 0 : i32
    return %arg0, %c0_i32, %c0_i32_0 : i32, i32, i32
  }
  func.func @transform_1(%arg0: i32) -> (i32, i32, i32) {
    %c0_i32 = arith.constant 0 : i32
    %c0_i32_0 = arith.constant 0 : i32
    %c0_i32_1 = arith.constant 0 : i32
    return %arg0, %c0_i32, %c0_i32_0 : i32, i32, i32
  }
  func.func @transform_2(%arg0: i32) -> (i32, i32) {
    %c0_i32 = arith.constant 0 : i32
    %c0_i32_0 = arith.constant 0 : i32
    %c0_i32_1 = arith.constant 0 : i32
    return %c0_i32, %c0_i32_0 : i32, i32
  }
  func.func @transform_3(%arg0: i32) -> (i32, i32) {
    %c0_i32 = arith.constant 0 : i32
    %c0_i32_0 = arith.constant 0 : i32
    %c0_i32_1 = arith.constant 0 : i32
    return %c0_i32, %c0_i32_0 : i32, i32
  }
  func.func @transform_4(%arg0: i32) -> (i32, i32) {
    %c0_i32 = arith.constant 0 : i32
    %c0_i32_0 = arith.constant 0 : i32
    %c0_i32_1 = arith.constant 0 : i32
    return %c0_i32, %c0_i32_0 : i32, i32
  }
  func.func @transform_5(%arg0: i32) -> (i32, i32) {
    %c0_i32 = arith.constant 0 : i32
    %c0_i32_0 = arith.constant 0 : i32
    %c0_i32_1 = arith.constant 0 : i32
    return %c0_i32, %c0_i32_0 : i32, i32
  }
  func.func @transform_6(%arg0: i32) -> (i32, i32) {
    %c0_i32 = arith.constant 0 : i32
    %c0_i32_0 = arith.constant 0 : i32
    %c0_i32_1 = arith.constant 0 : i32
    return %c0_i32, %c0_i32_0 : i32, i32
  }
  func.func @transform_7(%arg0: i32) -> (i32, i32) {
    %c0_i32 = arith.constant 0 : i32
    %c0_i32_0 = arith.constant 0 : i32
    %c0_i32_1 = arith.constant 0 : i32
    return %c0_i32, %c0_i32_0 : i32, i32
  }
  func.func @transform_8(%arg0: i32) -> (i32, i32) {
    %c0_i32 = arith.constant 0 : i32
    %c0_i32_0 = arith.constant 0 : i32
    %c0_i32_1 = arith.constant 0 : i32
    return %c0_i32, %c0_i32_0 : i32, i32
  }
  func.func @transform_9(%arg0: i32) -> (i32, i32) {
    %c0_i32 = arith.constant 0 : i32
    %c0_i32_0 = arith.constant 0 : i32
    %c0_i32_1 = arith.constant 0 : i32
    return %c0_i32, %c0_i32_0 : i32, i32
  }
  func.func @transform_10(%arg0: i32) -> (i32, i32) {
    %c0_i32 = arith.constant 0 : i32
    %c0_i32_0 = arith.constant 0 : i32
    %c0_i32_1 = arith.constant 0 : i32
    return %c0_i32, %c0_i32_0 : i32, i32
  }
  func.func @transform_11(%arg0: i32) -> (i32, i32) {
    %c0_i32 = arith.constant 0 : i32
    %c0_i32_0 = arith.constant 0 : i32
    %c0_i32_1 = arith.constant 0 : i32
    return %c0_i32, %c0_i32_0 : i32, i32
  }
  func.func @transform_12(%arg0: i32) -> (i32, i32, i32) {
    %c0_i32 = arith.constant 0 : i32
    %c0_i32_0 = arith.constant 0 : i32
    %c0_i32_1 = arith.constant 0 : i32
    return %arg0, %c0_i32, %c0_i32_0 : i32, i32, i32
  }
  func.func @transform_13(%arg0: i32) -> (i32, i32, i32, i32) {
    %c0_i32 = arith.constant 0 : i32
    %c0_i32_0 = arith.constant 0 : i32
    %c0_i32_1 = arith.constant 0 : i32
    %c0_i32_2 = arith.constant 0 : i32
    return %arg0, %c0_i32, %c0_i32_0, %c0_i32_1 : i32, i32, i32, i32
  }
}

</mosaic_0001>

<bundles_post_ra>
// kernel: tpu_custom_call.1
= control target key start
LH: loop header
LB: loop body
LE: loop exit
PB: predicated region body
PF: predicated region fallthrough
CT: control target
= control target key end

     0   :  { %s3142_s0 = inlined_call_operand.hbm [shape: f32[2,8,32], index: 0, kind: input, shape index: {}]   ;;  %s3143_s1 = inlined_call_operand.hbm [shape: f32[2,1,8], index: 1, kind: input, shape index: {}]   ;;  %s3144_s2 = inlined_call_operand.hbm [shape: f32[32,32], index: 2, kind: input, shape index: {}]   ;;  %s3145_s3 = inlined_call_operand.vmem [shape: f32[1,32], index: 3, kind: input, shape index: {}]   ;;  %s3146_s4 = inlined_call_operand.hbm [shape: f32[32,32], index: 4, kind: input, shape index: {}]   ;;  %s3147_s5 = inlined_call_operand.vmem [shape: f32[1,32], index: 5, kind: input, shape index: {}]   ;;  %s3148_s6 = inlined_call_operand.hbm [shape: f32[32,32], index: 6, kind: input, shape index: {}]   ;;  %s3149_s7 = inlined_call_operand.vmem [shape: f32[1,32], index: 7, kind: input, shape index: {}]   ;;  %s3150_s8 = inlined_call_operand.hbm [shape: f32[32,32], index: 8, kind: input, shape index: {}]   ;;  %s3151_s9 = inlined_call_operand.vmem [shape: f32[1,32], index: 9, kind: input, shape index: {}]   ;;  %s3152_s10 = inlined_call_operand.vmem [shape: f32[1,32], index: 10, kind: input, shape index: {}]   ;;  %s3153_s11 = inlined_call_operand.vmem [shape: f32[1,32], index: 11, kind: input, shape index: {}]   ;;  %s3154_s12 = inlined_call_operand.hbm [shape: f32[2,8,32], index: 12, kind: output, shape index: {0}]   ;;  %s3155_s13 = inlined_call_operand.hbm [shape: f32[2,4,8,8], index: 13, kind: output, shape index: {1}]  }
   0x1   :  { %3165 = sst [smem:[#allocation28_spill]] %s3142_s0 }
   0x2   :  { %3166 = sst [smem:[#allocation29_spill]] %s3144_s2 }
   0x3   :  { %3167 = sst [smem:[#allocation30_spill]] %s3146_s4 }
   0x4   :  { %3168 = sst [smem:[#allocation31_spill]] %s3148_s6 }
   0x5   :  { %3169 = sst [smem:[#allocation32_spill]] %s3150_s8 }
   0x6   :  { %19 = vsyncpa [#allocation3], 0 }
   0x7   :  { %21 = vsyncpa [#allocation3 + $0x1], 0 }
   0x8   :  { %22 = vsyncpa [#allocation6], 0 }
   0x9   :  { %24 = vsyncpa [#allocation6 + $0x1], 0 }
   0xa   :  { %25 = vsyncpa [#allocation9], 0 }
   0xb   :  { %26 = vsyncpa [#allocation12], 0 }
   0xc   :  { %27 = vsyncpa [#allocation4], 0 }
   0xd   :  { %29 = vsyncpa [#allocation4 + $0x1], 0 }
   0xe   :  { %30 = vsyncpa [#allocation15], 0 }
   0xf   :  { %32 = vsyncpa [#allocation15 + $0x1], 0  ;;  %s2689_s25 = smov 0   ;;  %s2691_s26 = smov 0  }
  0x10   :  { %s2693_s27 = smov 0   ;;  %s2695_s28 = smov 0  }
  0x11 LB: > { %3170 = sst [smem:[#allocation23_spill]] %s2588_s25  ;;  %s2602_s29 = smov [#allocation7]   ;;  %s2600_s28 = sphi %s2695_s28, %s3201_s28   ;;  %s2596_s27 = sphi %s2693_s27, %s3203_s27   ;;  %s2592_s26 = sphi %s2691_s26, %s3205_s26   ;;  %s2588_s25 = sphi %s2689_s25, %s3204_s25  }
  0x12   : > { %3171 = sst [smem:[#allocation24_spill]] %s2596_s27  ;;  %s369_s30 = sshll.u32 %s2602_s29, 4  ;;  %s370_s30 = int_to_ptr.vmem [resolvable:$true] %s369_s30 }
  0x13   : > { %s2710_s14 = sadd.s32 4294967295, %s2600_s28   ;;  %p2020_p0 = scmp.ge.s32.totalorder %s2600_s28, 1 }
  0x14   : > { %p3159_p1 = scmp.eq.s32.totalorder %s2710_s14, 0  ;;  %p357_p2 = scmp.lt.s32.totalorder %s2600_s28, 3 }
  0x15   : > { %s2603_s16 = smov [#allocation8]   ;;  %s2604_s19 = smov [#allocation10]  }
  0x16   : > { %p2715_p3 = pnand %p2020_p0, %p357_p2  ;;  %s385_s17 = sshll.u32 %s2603_s16, 4  ;;  %s2728_s17 = int_to_ptr.vmem [resolvable:$true] %s385_s17 }
  0x17   : > { %s401_s20 = sshll.u32 %s2604_s19, 4  ;;  %s2341_s21 = scalar_lea.vmem %s370_s30, 512  ;;  %s2730_s20 = int_to_ptr.vmem [resolvable:$true] %s401_s20 }
  0x18   : > { %s3172_s15 = scalar_select %p2715_p3, 1, 0 }
  0x19   : > { %p2230_p5 = pneg %p2715_p3  ;;  %p2342_p8 = scmp.ne.s32.totalorder %s370_s30, %s2341_s21 }
  0x1a   : > { %p2349_p11 = scmp.lt.s32.totalorder %s370_s30, %s370_s30  ;;  %p2350_p12 = scmp.lt.s32.totalorder %s2341_s21, %s2341_s21 }
  0x1b   : > { %p2724_p6 = pnand %p2230_p5, %p3159_p1 }
  0x1c   : > { %p2351_p13 = por %p2350_p12, %p2349_p11 }
  0x1d   : > { %p2332_p7 = pneg %p2724_p6 }
  0x1f   : > { %p2344_p9 = pnand %p2342_p8, %p2332_p7 }
  0x21   : > { %p2345_p10 = pneg %p2344_p9 }
  0x23   : > { %p2352_p0 = pnand %p2351_p13, %p2345_p10 }
  0x25   : > { %2355 = shalt.err (!%p2352_p0)
}
  0x26   : > { %s2605_s22 = smov 128   ;;  %s2606_s23 = smov 8  }
  0x27   : > { %s3174_s2 = sld [smem:[#allocation29_spill]]  ;;  %s2367_s16 = scalar_lea.vmem %s2728_s17, 512 }
  0x28   : > { %p2368_p2 = scmp.ne.s32.totalorder %s2728_s17, %s2367_s16  ;;  %p2375_p9 = scmp.lt.s32.totalorder %s2728_s17, %s2728_s17 }
  0x29   : > { %p2376_p10 = scmp.lt.s32.totalorder %s2367_s16, %s2367_s16 }
  0x2a   : > { %p2370_p5 = pnand %p2368_p2, %p2332_p7 }
  0x2b   : > { %p2377_p11 = por %p2376_p10, %p2375_p9 }
  0x2c   : > { %p2371_p8 = pneg %p2370_p5 }
  0x2d   : > { %2233 = dma.hbm_to_vmem [thread:$0]  (!%p2724_p6), %s3174_s2, 512, %s370_s30, [#allocation6], %s2605_s22, %s2605_s22, %s2606_s23  }
  0x2e   : > { %p2378_p12 = pnand %p2377_p11, %p2371_p8 }
  0x30   : > { %2381 = shalt.err (!%p2378_p12)
}
  0x31   : > { %s3175_s4 = sld [smem:[#allocation30_spill]]  ;;  %s2393_s21 = scalar_lea.vmem %s2730_s20, 512 }
  0x32   : > { %p2394_p13 = scmp.ne.s32.totalorder %s2730_s20, %s2393_s21  ;;  %p2401_p5 = scmp.lt.s32.totalorder %s2730_s20, %s2730_s20 }
  0x33   : > { %p2402_p8 = scmp.lt.s32.totalorder %s2393_s21, %s2393_s21 }
  0x34   : > { %p2396_p0 = pnand %p2394_p13, %p2332_p7 }
  0x35   : > { %p2403_p9 = por %p2402_p8, %p2401_p5 }
  0x36   : > { %p2397_p2 = pneg %p2396_p0 }
  0x37   : > { %2236 = dma.hbm_to_vmem [thread:$0]  (!%p2724_p6), %s3175_s4, 512, %s2728_s17, [#allocation9], %s2605_s22, %s2605_s22, %s2606_s23  }
  0x38   : > { %p2404_p10 = pnand %p2403_p9, %p2397_p2 }
  0x3a   : > { %2407 = shalt.err (!%p2404_p10)
}
  0x3b   : > { %s3176_s6 = sld [smem:[#allocation31_spill]]  ;;  %s2607_s29 = smov [#allocation11]  }
  0x3c   : > { %s417_s16 = sshll.u32 %s2607_s29, 4  ;;  %s418_s16 = int_to_ptr.vmem [resolvable:$true] %s417_s16 }
  0x3d   : > { %s2419_s19 = scalar_lea.vmem %s418_s16, 512  ;;  %p2427_p0 = scmp.lt.s32.totalorder %s418_s16, %s418_s16 }
  0x3e   : > { %p2420_p11 = scmp.ne.s32.totalorder %s418_s16, %s2419_s19  ;;  %p2428_p2 = scmp.lt.s32.totalorder %s2419_s19, %s2419_s19 }
  0x40   : > { %p2422_p12 = pnand %p2420_p11, %p2332_p7  ;;  %p2429_p5 = por %p2428_p2, %p2427_p0 }
  0x41   : > { %2239 = dma.hbm_to_vmem [thread:$0]  (!%p2724_p6), %s3176_s6, 512, %s2730_s20, [#allocation9], %s2605_s22, %s2605_s22, %s2606_s23  }
  0x42   : > { %p2423_p13 = pneg %p2422_p12 }
  0x44   : > { %p2430_p8 = pnand %p2429_p5, %p2423_p13 }
  0x46   : > { %2433 = shalt.err (!%p2430_p8)
}
  0x47   : > { %s3177_s8 = sld [smem:[#allocation32_spill]]  ;;  %s2019_s18 = sadd.s32 4294967294, %s2600_s28  }
  0x48   : > { %s2790_s21 = sadd.s32 1, %s2600_s28   ;;  %s45_s17 = sadd.s32 1, %s2596_s27 }
  0x49   : > { %3178 = sst [smem:[#allocation25_spill]] %s2790_s21  ;;  %s42_s24 = ssub.s32 %s2600_s28, %s2790_s21 }
  0x4a   : > { %p43_p7 = scmp.eq.s32.totalorder %s42_s24, 0  ;;  %p52_p9 = scmp.ne.s32.totalorder %s2596_s27, %s2592_s26 }
  0x4b   : > { %p53_p10 = scmp.eq.s32.totalorder %s2600_s28, 0  ;;  %p58_p11 = scmp.ne.s32.totalorder %s2592_s26, %s2588_s25 }
  0x4c   : > { %s2801_s29 = scalar_select %p43_p7, %s2596_s27, %s45_s17  }
  0x4d   : > { %2242 = dma.hbm_to_vmem [thread:$0]  (!%p2724_p6), %s3177_s8, 512, %s418_s16, [#allocation12], %s2605_s22, %s2605_s22, %s2606_s23  }
  0x4e   : > { %3179 = sst [smem:[#allocation26_spill]] %s2801_s29  ;;  %p2803_p12 = por %p53_p10, %p52_p9 }
  0x4f   : > { %p2809_p6 = por %p3159_p1, %p58_p11  ;;  %p318_p13 = scmp.eq.s32.totalorder %s2710_s14, 1 }
  0x50   : > { %p324_p0 = scmp.eq.s32.totalorder %s2019_s18, 1  ;;  %p2261_p2 = scmp.lt.s32.totalorder %s2600_s28, 2 }
  0x51   : > { %s3181_s22 = scalar_select %p2809_p6, 1, 0 }
  0x52   : > { %s2816_s23 = sand.u32 1, %s2596_s27   ;;  %p2818_p5 = por %p318_p13, %p52_p9 }
  0x53   : > { %p2822_p8 = por %p324_p0, %p58_p11  ;;  %s2026_s30 = sshll.u32 %s2816_s23, 3 }
  0x54   : > { %s3182_s16 = scalar_select %p2818_p5, 1, 0 }
  0x55   : > { %s3183_s20 = scalar_select %p2822_p8, 1, 0 }
  0x56   : > { %s2027_s24 = sshll.u32 %s2600_s28, 7  ;;  %s3185_s0 = sld [smem:[#allocation28_spill]] }
  0x57   : > { %3184 = sst [smem:[#allocation27_spill]] %s3183_s20  ;;  %s444_s18 = scalar_lea.vmem [#allocation2], %s2026_s30 }
  0x58   : > { %s451_s6 = sshll.u32 %s444_s18, 4  ;;  %p2837_p7 = pnand %p2261_p2, %p2803_p12  ;;  %s2833_s6 = int_to_ptr.vmem [resolvable:$true] %s451_s6 }
  0x59   : > { %s441_s27 = scalar_lea.sflag [#allocation3], %s2816_s23 }
  0x5a   : > { %p2436_p10 = pneg %p2837_p7 }
  0x5c   : > { %s2831_s4 = scalar_lea.hbm %s3185_s0, %s2027_s24  ;;  %s2439_s19 = scalar_lea.hbm %s3185_s0, 256 }
  0x5d   : > { %s2434_s21 = scalar_lea.hbm %s2831_s4, 128  ;;  %p2440_p12 = scmp.lt.s32.totalorder %s2831_s4, %s3185_s0 }
  0x5e   : > { %p2435_p9 = scmp.ne.s32.totalorder %s2831_s4, %s2434_s21  ;;  %p2441_p0 = scmp.lt.s32.totalorder %s2439_s19, %s2434_s21 }
  0x60   : > { %p2437_p11 = pnand %p2436_p10, %p2435_p9  ;;  %p2442_p2 = por %p2441_p0, %p2440_p12 }
  0x62   : > { %p2438_p13 = pneg %p2437_p11 }
  0x64   : > { %p2443_p4 = pnand %p2442_p2, %p2438_p13 }
  0x66   : > { %2446 = shalt.err (!%p2443_p4)
}
  0x67   : > { %s2447_s18 = scalar_lea.vmem %s2833_s6, 128  ;;  %s2608_s2 = smov [#allocation2]  }
  0x68   : > { %p2448_p1 = scmp.ne.s32.totalorder %s2833_s6, %s2447_s18  ;;  %s2452_s30 = sshll.u32 %s2608_s2, 4  ;;  %s2453_s30 = int_to_ptr.vmem [resolvable:$false] %s2452_s30 }
  0x69   : > { %s2454_s29 = scalar_lea.vmem %s2453_s30, 256  ;;  %p2455_p8 = scmp.lt.s32.totalorder %s2833_s6, %s2453_s30 }
  0x6a   : > { %p2450_p9 = pnand %p2448_p1, %p2436_p10  ;;  %p2456_p5 = scmp.lt.s32.totalorder %s2454_s29, %s2447_s18 }
  0x6c   : > { %p2451_p11 = pneg %p2450_p9  ;;  %p2457_p6 = por %p2456_p5, %p2455_p8 }
  0x6e   : > { %p2458_p12 = pnand %p2457_p6, %p2451_p11 }
  0x70   : > { %2461 = shalt.err (!%p2458_p12)
}
  0x71   : > { %2246 = dma.hbm_to_vmem [thread:$0]  (!%p2837_p7), %s2831_s4, 128, %s2833_s6, %s441_s27  }
  0x72   : > { %s2028_s21 = sshll.u32 %s2600_s28, 4  ;;  %s461_s19 = scalar_lea.vmem [#allocation5], %s2816_s23 }
  0x73   : > { %s468_s24 = sshll.u32 %s461_s19, 4  ;;  %s466_s30 = scalar_lea.hbm %s3143_s1, %s2028_s21  ;;  %s469_s24 = int_to_ptr.vmem [resolvable:$true] %s468_s24 }
  0x74   : > { %s3187_s29 = sand.u32 1, %s2600_s28   ;;  %s2462_s0 = scalar_lea.hbm %s466_s30, 16 }
  0x75   : > { %s459_s18 = scalar_lea.sflag [#allocation6], %s3187_s29  ;;  %p2463_p1 = scmp.ne.s32.totalorder %s466_s30, %s2462_s0 }
  0x76   : > { %s2467_s4 = scalar_lea.hbm %s3143_s1, 32  ;;  %p2468_p5 = scmp.lt.s32.totalorder %s466_s30, %s3143_s1 }
  0x77   : > { %p2465_p4 = pnand %p2463_p1, %p2436_p10  ;;  %p2469_p8 = scmp.lt.s32.totalorder %s2467_s4, %s2462_s0 }
  0x79   : > { %p2466_p6 = pneg %p2465_p4  ;;  %p2470_p13 = por %p2469_p8, %p2468_p5 }
  0x7b   : > { %p2471_p0 = pnand %p2470_p13, %p2466_p6 }
  0x7d   : > { %2474 = shalt.err (!%p2471_p0)
}
  0x7e   : > { %s2475_s23 = scalar_lea.vmem %s469_s24, 16  ;;  %s2609_s21 = smov [#allocation5]  }
  0x7f   : > { %p2476_p2 = scmp.ne.s32.totalorder %s469_s24, %s2475_s23  ;;  %s2480_s19 = sshll.u32 %s2609_s21, 4  ;;  %s2481_s19 = int_to_ptr.vmem [resolvable:$false] %s2480_s19 }
  0x80   : > { %s2482_s25 = scalar_lea.vmem %s2481_s19, 32  ;;  %p2483_p12 = scmp.lt.s32.totalorder %s469_s24, %s2481_s19 }
  0x81   : > { %p2478_p9 = pnand %p2476_p2, %p2436_p10  ;;  %p2484_p1 = scmp.lt.s32.totalorder %s2482_s25, %s2475_s23 }
  0x83   : > { %p2479_p11 = pneg %p2478_p9  ;;  %p2485_p4 = por %p2484_p1, %p2483_p12 }
  0x85   : > { %p2486_p3 = pnand %p2485_p4, %p2479_p11 }
  0x87   : > { %2489 = shalt.err (!%p2486_p3)
}
  0x88   : > { %2249 = dma.hbm_to_vmem [thread:$0]  (!%p2837_p7), %s466_s30, 16, %s469_s24, %s459_s18  }
  0x89   : > { %p3188_p6 = scmp.ne.s32.totalorder %s3172_s15, 0 }
  0x8a   : > { %s2891_s0 = sand.u32 (!%p3188_p6), 1, %s2592_s26   ;;  %p3189_p10 = scmp.ne.s32.totalorder (!%p3188_p6), %s3181_s22, 0 }
  0x8b   : > { %477 = sbr.rel (%p3188_p6) target bundleno = 2922 (0xb6a), region = 68  ;;  %s2030_s20 = sshll.u32 (!%p3188_p6), %s2891_s0, 3 }
  0x8c   : > { %s480_s17 = scalar_lea.sflag (!%p3188_p6), [#allocation3], %s2891_s0  ;;  %s2897_s2 = scalar_lea.vmem (!%p3188_p6), [#allocation2], %s2030_s20 }
  0x90   : > { %2559 = dma.done.wait (%p3189_p10), %s480_s17, 128  }
  0x91   : > { %2561 = vsyncadd (%p3189_p10), %s480_s17, 4294967168  ;;  %s488_s8 = sand.u32 1, %s2710_s14   ;;  %s491_s24 = scalar_lea.vmem [#allocation5], %s2891_s0 }
  0x92   : > { %s489_s15 = scalar_lea.sflag [#allocation6], %s488_s8 }
  0x93   : > { %2563 = dma.done.wait (%p3189_p10), %s489_s15, 16  }
  0x94   : > { %2565 = vsyncadd (%p3189_p10), %s489_s15, 4294967280  ;;  %p3190_p3 = scmp.eq.s32.totalorder %s2710_s14, 0 }
  0x96   : > { %2567 = dma.done.wait (%p3190_p3), [#allocation6], 512   ;;  %p3191_p7 = pmov %p3190_p3 }
  0x97   : > { %p3192_p5 = pmov %p3190_p3 }
  0x98   : > { %2569 = vsyncadd (%p3191_p7), [#allocation6], 4294966784 }
  0x99   : > { %2571 = dma.done.wait (%p3192_p5), [#allocation9], 1024   ;;  %p3193_p8 = pmov %p3190_p3 }
  0x9a   : > { %p3194_p13 = pmov %p3190_p3 }
  0x9b   : > { %2573 = vsyncadd (%p3193_p8), [#allocation9], 4294966272 }
  0x9c   : > { %2575 = dma.done.wait (%p3194_p13), [#allocation12], 512   ;;  %p3195_p0 = pmov %p3190_p3 }
  0x9d   : > { %v2610_v0 = vmov 0.0   ;;  %vm2611_vm0 = vmmov 0   ;;  %v649_v1 = vld [vmem:[#allocation8 + $0x18] sm:$0xff]  ;;  %v648_v3 = vld [vmem:[#allocation8 + $0x10] sm:$0xff]  ;;  %v647_v5 = vld [vmem:[#allocation8 + $0x8] sm:$0xff]  ;;  %vm572_vm1 = vcmask 261120  }
  0x9e   : > { %2577 = vsyncadd (%p3195_p0), [#allocation12], 4294966784  ;;  %2124 = vmatprep.subr.mxu1 %v2610_v0  ;;  %2113 = vmatprep.subr.mxu0 %v2610_v0  ;;  %v564_v2 = vld [vmem:[#allocation7 + $0x18] sm:$0xff]  ;;  %v563_v4 = vld [vmem:[#allocation7 + $0x10] sm:$0xff]  ;;  %vm812_vm2 = vcmask 64512   ;;  %s2612_s4 = smov 120  }
  0x9f   : > { %2132 = vmatprep.mubr.msk.f32.mxu1 %vm2611_vm0, %v2610_v0  ;;  %2121 = vmatprep.mubr.msk.f32.mxu0 %vm2611_vm0, %v2610_v0  ;;  %v562_v6 = vld [vmem:[#allocation7 + $0x8] sm:$0xff]  ;;  %v646_v7 = vld [vmem:[#allocation8] sm:$0xff]  ;;  %v730_v10 = vld [vmem:[#allocation10 + $0x18] sm:$0xff]  ;;  %s2613_s23 = smov 112   ;;  %s2036_s21 = sshll.u32 %s2891_s0, 5 }
  0xa0   : > { %2125 = vmatpush3.msra.mxu1 %v649_v1  ;;  %2114 = vmatpush3.msra.mxu0 %v564_v2  ;;  %v561_v8 = vld [vmem:[#allocation7] sm:$0xff]  ;;  %v2932_v9 = vld [vmem:[%s2897_s2] sm:$0xff]  ;;  %s3003_s19 = scalar_lea.vmem [#allocation14], %s2036_s21  ;;  %s2614_s25 = smov 104  }
  0xa1   : > { %2126 = vmatprep.subr.mxu1 %v2610_v0  ;;  %2115 = vmatprep.subr.mxu0 %v2610_v0  ;;  %v729_v11 = vld [vmem:[#allocation10 + $0x10] sm:$0xff]  ;;  %v728_v12 = vld [vmem:[#allocation10 + $0x8] sm:$0xff]  ;;  %v727_v13 = vld [vmem:[#allocation10] sm:$0xff]  ;;  %s2073_s8 = sshll.u32 %s2710_s14, 9  ;;  %s1856_s15 = sshll.u32 %s3003_s19, 4  ;;  %s3073_s15 = int_to_ptr.vmem [resolvable:$true] %s1856_s15 }
  0xa2   : > { %2127 = vmatpush3.msra.mxu1 %v648_v3  ;;  %2116 = vmatpush3.msra.mxu0 %v563_v4  ;;  %v2039_v14 = vld [vmem:[%s3147_s5] ss:$0 sm:$0xff]  ;;  %v808_v57 = vld [vmem:[#allocation11] sm:$0xff]  ;;  %s3071_s30 = scalar_lea.hbm %s3155_s13, %s2073_s8  ;;  %s1830_s29 = scalar_lea.sflag [#allocation15], %s2891_s0 }
  0xa3   : > { %2128 = vmatprep.subr.mxu1 %v2610_v0  ;;  %2117 = vmatprep.subr.mxu0 %v2610_v0  ;;  %v2037_v15 = vld [vmem:[%s3145_s3] ss:$0 sm:$0xff]  ;;  %s2490_s18 = scalar_lea.vmem %s3073_s15, 512  ;;  %p3196_p9 = scmp.ne.s32.totalorder %s3182_s16, 0 }
  0xa4   : > { %2129 = vmatpush3.msra.mxu1 %v647_v5  ;;  %2118 = vmatpush3.msra.mxu0 %v562_v6  ;;  %v2041_v22 = vld [vmem:[%s3149_s7] ss:$0 sm:$0xff]  ;;  %p2491_p2 = scmp.ne.s32.totalorder %s3073_s15, %s2490_s18 }
  0xa5   : > { %2130 = vmatprep.subr.mxu1 %v2610_v0  ;;  %2119 = vmatprep.subr.mxu0 %v2610_v0  ;;  %v2989_v29 = vld [vmem:[%s491_s24] ss:$0 sm:$0xff] }
  0xa6   : > { %2131 = vmatpush3.msra.mxu1 %v646_v7  ;;  %2120 = vmatpush3.msra.mxu0 %v561_v8  ;;  %v809_v52 = vld [vmem:[#allocation11 + $0x8] sm:$0xff]  ;;  %p2492_p11 = pnand %p2491_p2, %p3196_p9 }
  0xa7   : > { %2133 = vmatmul.mubr.msk.f32.vlgmr.msra.gmra.mxu1 %vm572_vm1, %v2932_v9  ;;  %2122 = vmatmul.mubr.msk.f32.vlgmr.msra.gmra.mxu0 %vm572_vm1, %v2932_v9 }
  0xa8   : > { %2146 = vmatprep.subr.mxu1 %v2610_v0  ;;  %2148 = vmatprep.mubr.msk.f32.mxu1 %vm2611_vm0, %v2610_v0  ;;  %p2493_p12 = pneg %p2492_p11 }
  0xa9   : > { %2135 = vmatprep.subr.mxu0 %v2610_v0  ;;  %2143 = vmatprep.mubr.msk.f32.mxu0 %vm2611_vm0, %v2610_v0 }
  0xaa   : > { %2136 = vmatpush3.msra.mxu0 %v730_v10 }
  0xab   : > { %2137 = vmatprep.subr.mxu0 %v2610_v0 }
  0xac   : > { %2138 = vmatpush3.msra.mxu0 %v729_v11 }
  0xad   : > { %2139 = vmatprep.subr.mxu0 %v2610_v0 }
  0xae   : > { %2140 = vmatpush3.msra.mxu0 %v728_v12 }
  0xaf   : > { %2141 = vmatprep.subr.mxu0 %v2610_v0 }
  0xb0   : > { %2142 = vmatpush3.msra.mxu0 %v727_v13 }
  0xb1   : > { %2144 = vmatmul.mubr.msk.f32.vlgmr.msra.gmra.mxu0 %vm572_vm1, %v2932_v9  ;;  %2156 = vmatprep.subr.mxu0 %v2610_v0 }
  0xb2   : > { %2158 = vmatprep.mubr.msk.f32.mxu0 %vm2611_vm0, %v2610_v0 }
 0x167   : > { %v723_v16 = vpop.f32.mrf.mxu1  ;;  %v642_v17 = vpop.f32.mrf.mxu0 }
 0x168   : > { %v2960_v18 = vadd.f32 %v2039_v14, %v723_v16  ;;  %v2962_v19 = vadd.f32 %v2037_v15, %v642_v17 }
 0x169   : > { %v2134_v20 = vpop.f32.mrf.mxu1  ;;  %v2123_v21 = vpop.f32.mrf.mxu0 }
 0x16a   : > { %984 = vrot.lane.b32.xlu0 %v2960_v18, %s2612_s4  ;;  %2147 = vmatpush3.xpose.msk.msra.mxu1 %vm812_vm2, %v2960_v18 }
 0x16b   : > { %2151 = vmatprep.subr.mxu1 %v2610_v0 }
 0x16d   : > { %2149 = vmatmul.mubr.msk.f32.vlgmr.msra.gmra.mxu1 %vm812_vm2, %v2962_v19 }
 0x16e   : > { %982 = vrot.lane.b32.xlu0 %v2962_v19, %s2612_s4  ;;  %2153 = vmatprep.mubr.msk.f32.mxu1 %vm2611_vm0, %v2610_v0 }
 0x171   : > { %v804_v23 = vpop.f32.mrf.mxu0 }
 0x172   : > { %v2978_v24 = vadd.f32 %v2041_v22, %v804_v23 }
 0x173   : > { %v2145_v25 = vpop.f32.mrf.mxu0 }
 0x174   : > { %2152 = vmatpush3.msra.mxu1 %v2978_v24 }
 0x175   : > { %2161 = vmatprep.subr.mxu1 %v2610_v0 }
 0x1dc   : > { %v985_v26 = vpop.permute.xlu0 %984 }
 0x1dd   : > { %2157 = vmatpush3.xpose.msk.msra.mxu0 %vm812_vm2, %v985_v26 }
 0x1de   : > { %2166 = vmatprep.subr.mxu0 %v2610_v0 }
 0x1e0   : > { %v983_v27 = vpop.permute.xlu0 %982 }
 0x1e1   : > { %2159 = vmatmul.mubr.msk.f32.vlgmr.msra.gmra.mxu0 %vm812_vm2, %v983_v27 }
 0x1e2   : > { %2168 = vmatprep.mubr.msk.f32.mxu0 %vm2611_vm0, %v2610_v0  ;;  %2167 = vmatpush3.msra.mxu0 %v809_v52 }
 0x1e3   : > { %2176 = vmatprep.subr.mxu0 %v2610_v0 }
 0x22d   : > { %v885_v28 = vpop.f32.mrf.mxu1 }
 0x22e   : > { %v889_v30 = vmul.f32 0.35355338, %v885_v28 }
 0x22f   : > { %v2150_v31 = vpop.f32.mrf.mxu1 }
 0x230   : > { %v896_v32 = vadd.f32 %v2989_v29, %v889_v30 }
 0x232   : > { %v897_v33 = vsel %vm812_vm2, %v896_v32, -inf }
 0x233   : > { %898 = vmax.xlane.f32.xlu1 %v897_v33 }
 0x2a1   : > { %v1056_v34 = vpop.f32.mrf.mxu0 }
 0x2a2   : > { %v1060_v35 = vmul.f32 0.35355338, %v1056_v34 }
 0x2a3   : > { %v2160_v36 = vpop.f32.mrf.mxu0 }
 0x2a4   : > { %v1061_v37 = vadd.f32 %v2989_v29, %v1060_v35 }
 0x2a6   : > { %v1062_v38 = vsel %vm812_vm2, %v1061_v37, -inf }
 0x2a7   : > { %1063 = vmax.xlane.f32.xlu1 %v1062_v38  ;;  %v811_v38 = vld [vmem:[#allocation11 + $0x18] sm:$0xff] }
 0x2bc   : > { %v899_v39 = vpop.xlane.xlu1 %898 }
 0x2bd   : > { %v900_v40 = vsub.f32 %v896_v32, %v899_v39 }
 0x2bf   : > { %v901_v41 = vmul.f32 1.442695, %v900_v40 }
 0x2c1   : > { %2312 = vpow2.f32 %v901_v41 }
 0x2ce   : > { %v2313_v42 = vpop.eup %2312 }
 0x2cf   : > { %v903_v43 = vsel %vm812_vm2, %v2313_v42, 0.0 }
 0x2d0   : > { %904 = vadd.xlane.f32.xlu0 %v903_v43 }
 0x2e6   : > { %1391 = vrot.lane.b32.xlu0 %v2978_v24, %s2613_s23 }
 0x330   : > { %v1064_v44 = vpop.xlane.xlu1 %1063 }
 0x331   : > { %v1065_v45 = vsub.f32 %v1061_v37, %v1064_v44 }
 0x333   : > { %v1066_v46 = vmul.f32 1.442695, %v1065_v45 }
 0x335   : > { %2314 = vpow2.f32 %v1066_v46  ;;  %v2063_v46 = vld [vmem:[%s3151_s9] ss:$0 sm:$0xff] }
 0x342   : > { %v2315_v47 = vpop.eup %2314 }
 0x343   : > { %v1068_v48 = vsel %vm812_vm2, %v2315_v47, 0.0 }
 0x344   : > { %1069 = vadd.xlane.f32.xlu1 %v1068_v48 }
 0x355   : > { %1076 = vrot.lane.b32.xlu1 %v2978_v24, %s2612_s4  ;;  %s2615_s4 = smov [#allocation14]  }
 0x356   : > { %s2494_s6 = sshll.u32 %s2615_s4, 4  ;;  %s2495_s6 = int_to_ptr.vmem [resolvable:$false] %s2494_s6 }
 0x357   : > { %s2496_s27 = scalar_lea.vmem %s2495_s6, 1024  ;;  %p2497_p1 = scmp.lt.s32.totalorder %s3073_s15, %s2495_s6 }
 0x358   : > { %p2498_p4 = scmp.lt.s32.totalorder %s2496_s27, %s2490_s18 }
 0x359   : > { %v905_v49 = vpop.xlane.xlu0 %904  ;;  %1300 = vrot.lane.b32.xlu1 %v2960_v18, %s2613_s23 }
 0x35a   : > { %2316 = vrcp.f32 %v905_v49  ;;  %p2499_p6 = por %p2498_p4, %p2497_p1 }
 0x35c   : > { %p2500_p10 = pnand %p2499_p6, %p2493_p12 }
 0x35d   : > { %1298 = vrot.lane.b32.xlu1 %v2962_v19, %s2613_s23  ;;  %v1392_v59 = vpop.permute.xlu0 %1391 }
 0x367   : > { %v2317_v50 = vpop.eup %2316 }
 0x368   : > { %v907_v51 = vmul.f32 %v2317_v50, %v2313_v42 }
 0x36a   : > { %908 = vst.msk [vmem:[%s3003_s19] sm:$0xff] %vm812_vm2, %v907_v51  ;;  %2154 = vmatmul.mubr.msk.f32.vlgmr.msra.gmra.mxu1 %vm812_vm2, %v907_v51 }
 0x36b   : > { %2163 = vmatprep.mubr.msk.f32.mxu1 %vm2611_vm0, %v2610_v0 }
 0x3cd   : > { %v1070_v53 = vpop.xlane.xlu1 %1069 }
 0x3ce   : > { %2318 = vrcp.f32 %v1070_v53 }
 0x3d1   : > { %v1077_v54 = vpop.permute.xlu1 %1076 }
 0x3d2   : > { %2162 = vmatpush3.msra.mxu1 %v1077_v54 }
 0x3d3   : > { %2171 = vmatprep.subr.mxu1 %v2610_v0 }
 0x3d5   : > { %v1301_v61 = vpop.permute.xlu1 %1300 }
 0x3d9   : > { %v1299_v1 = vpop.permute.xlu1 %1298 }
 0x3db   : > { %v2319_v55 = vpop.eup %2318 }
 0x3dc   : > { %v1072_v56 = vmul.f32 %v2319_v55, %v2315_v47 }
 0x3de   : > { %2049 = vst.msk [vmem:[%s3003_s19 + $0x8] sm:$0xff] %vm812_vm2, %v1072_v56  ;;  %2164 = vmatmul.mubr.msk.f32.vlgmr.msra.gmra.mxu1 %vm812_vm2, %v1072_v56 }
 0x3df   : > { %2172 = vmatpush3.msra.mxu1 %v808_v57  ;;  %2173 = vmatprep.mubr.msk.f32.mxu1 %vm2611_vm0, %v2610_v0 }
 0x3e0   : > { %2181 = vmatprep.subr.mxu1 %v2610_v0 }
 0x42a   : > { %v978_v58 = vpop.f32.mrf.mxu1 }
 0x42b   : > { %2174 = vmatmul.mubr.msk.f32.vlgmr.msra.gmra.mxu1 %vm812_vm2, %v978_v58 }
 0x42c   : > { %2182 = vmatpush3.msra.mxu1 %v1392_v59  ;;  %v2155_v60 = vpop.f32.mrf.mxu1  ;;  %2183 = vmatprep.mubr.msk.f32.mxu1 %vm2611_vm0, %v2610_v0 }
 0x42d   : > { %2191 = vmatprep.subr.mxu1 %v2610_v0 }
 0x49e   : > { %v1148_v62 = vpop.f32.mrf.mxu1 }
 0x49f   : > { %2169 = vmatmul.mubr.msk.f32.vlgmr.msra.gmra.mxu0 %vm812_vm2, %v1148_v62 }
 0x4a0   : > { %2177 = vmatpush3.xpose.msk.msra.mxu0 %vm812_vm2, %v1301_v61  ;;  %v2165_v63 = vpop.f32.mrf.mxu1  ;;  %2178 = vmatprep.mubr.msk.f32.mxu0 %vm2611_vm0, %v2610_v0 }
 0x4a1   : > { %2186 = vmatprep.subr.mxu0 %v2610_v0 }
 0x4a3   : > { %2179 = vmatmul.mubr.msk.f32.vlgmr.msra.gmra.mxu0 %vm812_vm2, %v1299_v1 }
 0x4a4   : > { %2188 = vmatprep.mubr.msk.f32.mxu0 %vm2611_vm0, %v2610_v0 }
 0x4eb   : > { %v1294_v2 = vpop.f32.mrf.mxu1 }
 0x4ed   : > { %v2175_v3 = vpop.f32.mrf.mxu1 }
 0x55f   : > { %v1221_v4 = vpop.f32.mrf.mxu0 }
 0x561   : > { %v2170_v5 = vpop.f32.mrf.mxu0 }
 0x563   : > { %v1372_v6 = vpop.f32.mrf.mxu0 }
 0x564   : > { %v1376_v7 = vmul.f32 0.35355338, %v1372_v6 }
 0x565   : > { %v2180_v8 = vpop.f32.mrf.mxu0 }
 0x566   : > { %v1377_v10 = vadd.f32 %v2989_v29, %v1376_v7 }
 0x568   : > { %v1378_v11 = vsel %vm812_vm2, %v1377_v10, -inf }
 0x569   : > { %1379 = vmax.xlane.f32.xlu1 %v1378_v11 }
 0x5f2   : > { %v1380_v12 = vpop.xlane.xlu1 %1379 }
 0x5f3   : > { %v1381_v13 = vsub.f32 %v1377_v10, %v1380_v12 }
 0x5f5   : > { %v1382_v14 = vmul.f32 1.442695, %v1381_v13 }
 0x5f7   : > { %2320 = vpow2.f32 %v1382_v14 }
 0x604   : > { %v2321_v15 = vpop.eup %2320 }
 0x605   : > { %v1384_v16 = vsel %vm812_vm2, %v2321_v15, 0.0 }
 0x606   : > { %1385 = vadd.xlane.f32.xlu0 %v1384_v16 }
 0x61c   : > { %1543 = vrot.lane.b32.xlu0 %v2960_v18, %s2614_s25 }
 0x620   : > { %1541 = vrot.lane.b32.xlu0 %v2962_v19, %s2614_s25  ;;  %v810_v19 = vld [vmem:[#allocation11 + $0x10] sm:$0xff] }
 0x621   : > { %2187 = vmatpush3.msra.mxu0 %v810_v19 }
 0x622   : > { %2196 = vmatprep.subr.mxu0 %v2610_v0 }
 0x68f   : > { %v1386_v17 = vpop.xlane.xlu0 %1385 }
 0x690   : > { %2322 = vrcp.f32 %v1386_v17 }
 0x693   : > { %v1544_v21 = vpop.permute.xlu0 %1543 }
 0x697   : > { %v1542_v18 = vpop.permute.xlu0 %1541 }
 0x69d   : > { %v2323_v20 = vpop.eup %2322 }
 0x69e   : > { %v1388_v22 = vmul.f32 %v2323_v20, %v2321_v15 }
 0x6a0   : > { %2055 = vst.msk [vmem:[%s3003_s19 + $0x10] sm:$0xff] %vm812_vm2, %v1388_v22  ;;  %2184 = vmatmul.mubr.msk.f32.vlgmr.msra.gmra.mxu1 %vm812_vm2, %v1388_v22 }
 0x6a1   : > { %2192 = vmatpush3.xpose.msk.msra.mxu1 %vm812_vm2, %v1544_v21  ;;  %2193 = vmatprep.mubr.msk.f32.mxu1 %vm2611_vm0, %v2610_v0 }
 0x6a2   : > { %2201 = vmatprep.subr.mxu1 %v2610_v0 }
 0x6a4   : > { %2194 = vmatmul.mubr.msk.f32.vlgmr.msra.gmra.mxu1 %vm812_vm2, %v1542_v18 }
 0x6a5   : > { %2203 = vmatprep.mubr.msk.f32.mxu1 %vm2611_vm0, %v2610_v0  ;;  %2202 = vmatpush3.msra.mxu1 %v811_v38 }
 0x760   : > { %v1463_v23 = vpop.f32.mrf.mxu1 }
 0x761   : > { %2189 = vmatmul.mubr.msk.f32.vlgmr.msra.gmra.mxu0 %vm812_vm2, %v1463_v23 }
 0x762   : > { %v2185_v25 = vpop.f32.mrf.mxu1  ;;  %2198 = vmatprep.mubr.msk.f32.mxu0 %vm2611_vm0, %v2610_v0  ;;  %v1295_v0 = vadd.f32 %v1294_v2, %v1221_v4 }
 0x764   : > { %v1615_v26 = vpop.f32.mrf.mxu1 }
 0x765   : > { %v1619_v27 = vmul.f32 0.35355338, %v1615_v26 }
 0x766   : > { %v2195_v28 = vpop.f32.mrf.mxu1 }
 0x767   : > { %v1620_v30 = vadd.f32 %v2989_v29, %v1619_v27 }
 0x769   : > { %v1621_v31 = vsel %vm812_vm2, %v1620_v30, -inf }
 0x76a   : > { %1622 = vmax.xlane.f32.xlu0 %v1621_v31 }
 0x7f3   : > { %v1623_v32 = vpop.xlane.xlu0 %1622 }
 0x7f4   : > { %v1624_v33 = vsub.f32 %v1620_v30, %v1623_v32 }
 0x7f6   : > { %v1625_v34 = vmul.f32 1.442695, %v1624_v33 }
 0x7f8   : > { %2324 = vpow2.f32 %v1625_v34 }
 0x805   : > { %v2325_v35 = vpop.eup %2324 }
 0x806   : > { %v1627_v36 = vsel %vm812_vm2, %v2325_v35, 0.0 }
 0x807   : > { %1628 = vadd.xlane.f32.xlu1 %v1627_v36 }
 0x818   : > { %1634 = vrot.lane.b32.xlu1 %v2978_v24, %s2614_s25 }
 0x821   : > { %v1536_v37 = vpop.f32.mrf.mxu0 }
 0x822   : > { %v1540_v39 = vadd.f32 %v1536_v37, %v1295_v0 }
 0x823   : > { %v2190_v29 = vpop.f32.mrf.mxu0 }
 0x890   : > { %v1629_v40 = vpop.xlane.xlu1 %1628 }
 0x891   : > { %2326 = vrcp.f32 %v1629_v40 }
 0x894   : > { %v1635_v41 = vpop.permute.xlu1 %1634 }
 0x895   : > { %2197 = vmatpush3.msra.mxu0 %v1635_v41 }
 0x89e   : > { %v2327_v42 = vpop.eup %2326 }
 0x89f   : > { %v1631_v43 = vmul.f32 %v2327_v42, %v2325_v35 }
 0x8a1   : > { %2060 = vst.msk [vmem:[%s3003_s19 + $0x18] sm:$0xff] %vm812_vm2, %v1631_v43  ;;  %2199 = vmatmul.mubr.msk.f32.vlgmr.msra.gmra.mxu0 %vm812_vm2, %v1631_v43 }
 0x961   : > { %v1706_v44 = vpop.f32.mrf.mxu0 }
 0x962   : > { %2204 = vmatmul.mubr.msk.f32.vlgmr.msra.gmra.mxu1 %vm812_vm2, %v1706_v44 }
 0x963   : > { %v2200_v24 = vpop.f32.mrf.mxu0 }
 0xa22   : > { %v1779_v45 = vpop.f32.mrf.mxu1 }
 0xa23   : > { %v1783_v47 = vadd.f32 %v1779_v45, %v1540_v39 }
 0xa24   : > { %v2205_v48 = vpop.f32.mrf.mxu1 }
 0xa25   : > { %v1791_v49 = vadd.f32 %v2063_v46, %v1783_v47 }
 0xa27   : > { %v1792_v50 = vadd.f32 %v1791_v49, %v2932_v9 }
 0xa29   : > { %v1793_v51 = vsel %vm572_vm1, %v1792_v50, 0.0 }
 0xa2a   : > { %1794 = vadd.xlane.f32.xlu1 %v1793_v51 }
 0xab3   : > { %v1795_v52 = vpop.xlane.xlu1 %1794 }
 0xab4   : > { %v1797_v53 = vmul.f32 0.03125, %v1795_v52 }
 0xab6   : > { %v1798_v54 = vsub.f32 %v1792_v50, %v1797_v53 }
 0xab8   : > { %v1799_v55 = vmul.f32 %v1798_v54, %v1798_v54 }
 0xaba   : > { %v1800_v56 = vsel %vm572_vm1, %v1799_v55, 0.0 }
 0xabb   : > { %1801 = vadd.xlane.f32.xlu0 %v1800_v56 }
 0xabc   : > { %2503 = shalt.err (!%p2500_p10)
}
 0xabd   : > { %s2504_s23 = scalar_lea.hbm %s3071_s30, 512  ;;  %s2508_s25 = scalar_lea.hbm %s3155_s13, 1024 }
 0xabe   : > { %p2505_p3 = scmp.ne.s32.totalorder %s3071_s30, %s2504_s23  ;;  %p2509_p8 = scmp.lt.s32.totalorder %s3071_s30, %s3155_s13 }
 0xabf   : > { %p2510_p13 = scmp.lt.s32.totalorder %s2508_s25, %s2504_s23 }
 0xac0   : > { %p2506_p7 = pnand %p2505_p3, %p3196_p9 }
 0xac1   : > { %p2511_p0 = por %p2510_p13, %p2509_p8 }
 0xac2   : > { %p2507_p5 = pneg %p2506_p7 }
 0xac4   : > { %p2512_p2 = pnand %p2511_p0, %p2507_p5 }
 0xac6   : > { %2515 = shalt.err (!%p2512_p2)
}
 0xac7   : > { %s2616_s8 = smov 128   ;;  %s2617_s24 = smov 8   ;;  %v2064_v60 = vld [vmem:[%s3152_s10] ss:$0 sm:$0xff] }
 0xac8   : > { %2227 = dma.vmem_to_hbm [thread:$0]  (%p3196_p9), %s3073_s15, 512, %s3071_s30, %s1830_s29, %s2616_s8, %s2616_s8, %s2617_s24  }
 0xac9   : > { %v2065_v62 = vld [vmem:[%s3153_s11] ss:$0 sm:$0xff]  ;;  %s2068_s27 = sshll.u32 %s2710_s14, 7  ;;  %s551_s23 = scalar_lea.vmem [#allocation13], %s2030_s20 }
 0xaca   : > { %s1843_s15 = sshll.u32 %s551_s23, 4  ;;  %s1841_s21 = scalar_lea.hbm %s3154_s12, %s2068_s27  ;;  %s1844_s15 = int_to_ptr.vmem [resolvable:$true] %s1843_s15 }
 0xacb   : > { %s1825_s19 = scalar_lea.sflag [#allocation4], %s2891_s0  ;;  %s2516_s25 = scalar_lea.vmem %s1844_s15, 128 }
 0xacc   : > { %p2517_p11 = scmp.ne.s32.totalorder %s1844_s15, %s2516_s25  ;;  %s2618_s17 = smov [#allocation13]  }
 0xacd   : > { %s2520_s14 = sshll.u32 %s2618_s17, 4  ;;  %s2521_s14 = int_to_ptr.vmem [resolvable:$false] %s2520_s14 }
 0xace   : > { %p2518_p12 = pnand %p2517_p11, %p3196_p9  ;;  %s2522_s20 = scalar_lea.vmem %s2521_s14, 256 }
 0xacf   : > { %p2523_p4 = scmp.lt.s32.totalorder %s1844_s15, %s2521_s14  ;;  %p2524_p6 = scmp.lt.s32.totalorder %s2522_s20, %s2516_s25 }
 0xad0   : > { %p2519_p1 = pneg %p2518_p12 }
 0xad1   : > { %p2525_p10 = por %p2524_p6, %p2523_p4 }
 0xad3   : > { %p2526_p3 = pnand %p2525_p10, %p2519_p1 }
 0xb44   : > { %v1802_v9 = vpop.xlane.xlu0 %1801 }
 0xb45   : > { %v1803_v57 = vmul.f32 0.03125, %v1802_v9 }
 0xb47   : > { %v1804_v58 = vadd.f32 1e-12, %v1803_v57 }
 0xb49   : > { %2328 = vrsqrt.f32 %v1804_v58 }
 0xb56   : > { %v2329_v59 = vpop.eup %2328 }
 0xb57   : > { %v1806_v61 = vmul.f32 %v2329_v59, %v1798_v54 }
 0xb59   : > { %v1814_v63 = vmul.f32 %v2064_v60, %v1806_v61 }
 0xb5b   : > { %v1822_v1 = vadd.f32 %v2065_v62, %v1814_v63 }
 0xb5d   : > { %1823 = vst.msk [vmem:[%s551_s23] sm:$0xff] %vm572_vm1, %v1822_v1 }
 0xb5e   : > { %2529 = shalt.err (!%p2526_p3)
}
 0xb5f   : > { %s2530_s2 = scalar_lea.hbm %s1841_s21, 128  ;;  %s2534_s24 = scalar_lea.hbm %s3154_s12, 256 }
 0xb60   : > { %p2531_p7 = scmp.ne.s32.totalorder %s1841_s21, %s2530_s2  ;;  %p2535_p13 = scmp.lt.s32.totalorder %s1841_s21, %s3154_s12 }
 0xb61   : > { %p2536_p0 = scmp.lt.s32.totalorder %s2534_s24, %s2530_s2 }
 0xb62   : > { %p2532_p5 = pnand %p2531_p7, %p3196_p9 }
 0xb63   : > { %p2537_p2 = por %p2536_p0, %p2535_p13 }
 0xb64   : > { %p2533_p8 = pneg %p2532_p5 }
 0xb66   : > { %p2538_p11 = pnand %p2537_p2, %p2533_p8 }
 0xb68   : > { %2541 = shalt.err (!%p2538_p11)
}
 0xb69   : > { %2226 = dma.vmem_to_hbm [thread:$0]  (%p3196_p9), %s1844_s15, 128, %s1841_s21, %s1825_s19  }
 0xb6a PF: > { %s3197_s4 = sld [smem:[#allocation23_spill]]  ;;  %p3200_p1 = scmp.ge.s32.totalorder %s2600_s28, 2 }
 0xb6b   : > { %s3198_s6 = sld [smem:[#allocation27_spill]] }
 0xb70   : > { %s1871_s27 = sand.u32 1, %s3197_s4  }
 0xb71   : > { %p3199_p12 = scmp.ne.s32.totalorder %s3198_s6, 0  ;;  %s1872_s23 = scalar_lea.sflag [#allocation4], %s1871_s27 }
 0xb73   : > { %p2251_p4 = pnand %p3200_p1, %p3199_p12 }
 0xb75   : > { %p2252_p6 = pneg %p2251_p4 }
 0xb77   : > { %2579 = dma.done.wait (%p2252_p6), %s1872_s23, 128  }
 0xb78   : > { %2581 = vsyncadd (%p2252_p6), %s1872_s23, 4294967168  ;;  %s1881_s30 = scalar_lea.sflag [#allocation15], %s1871_s27 }
 0xb79   : > { %2583 = dma.done.wait (%p2252_p6), %s1881_s30, 512  }
 0xb7a   : > { %2585 = vsyncadd (%p2252_p6), %s1881_s30, 4294966784  ;;  %s3201_s28 = sld [smem:[#allocation25_spill]]  ;;  %s3204_s25 = smov %s2592_s26 }
 0xb7b   : > { %s3202_s29 = sld [smem:[#allocation24_spill]] }
 0xb7c   : > { %s3203_s27 = sld [smem:[#allocation26_spill]] }
 0xb80   : > { %p35_p9 = scmp.ge.s32.totalorder %s3201_s28, 4  }
 0xb81   : > { %s3205_s26 = smov %s3202_s29 }
 0xb82   :  { %37 = sbr.rel (!%p35_p9) target bundleno = 17 (0x11), region = 162 }
 0xb87   :  { %1886 = vsyncpa [#allocation3], 1 }
 0xb88   :  { %1888 = vsyncpa [#allocation3 + $0x1], 1 }
 0xb89   :  { %1889 = vsyncpa [#allocation6], 1 }
 0xb8a   :  { %1891 = vsyncpa [#allocation6 + $0x1], 1 }
 0xb8b   :  { %1892 = vsyncpa [#allocation9], 1 }
 0xb8c   :  { %1893 = vsyncpa [#allocation12], 1 }
 0xb8d   :  { %1894 = vsyncpa [#allocation4], 1 }
 0xb8e   :  { %1896 = vsyncpa [#allocation4 + $0x1], 1 }
 0xb8f   :  { %1897 = vsyncpa [#allocation15], 1 }
 0xb90   :  { %1899 = vsyncpa [#allocation15 + $0x1], 1 }

</bundles_post_ra>
